<compile_context>
chip_gen: v5e
topology: v5e:2x2
jax: 0.10.0
libtpu: 0.0.40
codegen_flags: <defaults>
</compile_context>

<pallas_src>
import functools

import jax
import jax.numpy as jnp
from jax.experimental import pallas as pl
from jax.experimental.pallas import tpu as pltpu

BN_EPS = 1e-5


def _round_up(x, m):
    return (x + m - 1) // m * m


# --------------------------------------------------------------------------
# Kernel 1: conv-as-matmul (bf16 MXU, f32 accumulate) + per-tile BN partials
# --------------------------------------------------------------------------
def conv_stats_kernel(w_ref, p_ref, conv_ref, stats_ref):
    # (C_out, K) @ (K, block_m) -> (C_out, block_m), f32 accumulation on MXU.
    conv = jnp.dot(w_ref[...], p_ref[...], preferred_element_type=jnp.float32)
    conv_ref[...] = conv

    # Per-channel partial sums for BatchNorm (lane reduction -> XLU slot).
    s1 = jnp.sum(conv, axis=1, keepdims=True)          # (C_out, 1)
    s2 = jnp.sum(conv * conv, axis=1, keepdims=True)   # (C_out, 1)
    stats_ref[0, :, 0:1] = s1
    stats_ref[0, :, 1:2] = s2


# --------------------------------------------------------------------------
# Kernel 2: folded BatchNorm affine + ReLU on lane-dense (C_out, M) tiles
# --------------------------------------------------------------------------
def bn_relu_kernel(conv_ref, scale_ref, bias_ref, o_ref):
    y = conv_ref[...] * scale_ref[...] + bias_ref[...]   # 2 VPU ops/element
    o_ref[...] = jnp.maximum(y, 0.0).astype(o_ref.dtype)


# --------------------------------------------------------------------------
# im2col (transposed): (N, C, H, W) -> (K, M) with K = C*kh*kw, M = N*Ho*Wo
# --------------------------------------------------------------------------
def im2col_t(x, kh, kw, stride, pad):
    n, c, h, w = x.shape
    xp = jnp.pad(x, ((0, 0), (0, 0), (pad, pad), (pad, pad)))
    ho = (h + 2 * pad - kh) // stride + 1
    wo = (w + 2 * pad - kw) // stride + 1
    cols = []
    for i in range(kh):
        for j in range(kw):
            cols.append(xp[:, :, i:i + stride * ho:stride, j:j + stride * wo:stride])
    p = jnp.stack(cols, axis=0).reshape(kh, kw, n, c, ho, wo)
    # -> (C, kh, kw, N, Ho, Wo): rows ordered (c, i, j) to match
    # weight.reshape(C_out, C_in*kh*kw); columns ordered (n, ho, wo).
    p = p.transpose(3, 0, 1, 2, 4, 5)
    return p.reshape(c * kh * kw, n * ho * wo), ho, wo


# --------------------------------------------------------------------------
# Wrapper: full BasicConvBlock forward
# --------------------------------------------------------------------------
@functools.partial(jax.jit, static_argnames=("stride", "pad", "block_m"))
def basic_conv_block(x, weight, gamma, beta, *, stride, pad, block_m=256):
    """x: (N, C_in, H, W); weight: (C_out, C_in, kh, kw); gamma/beta: (C_out,).
    Returns (N, C_out, Ho, Wo), float32 (BatchNorm2d in training mode)."""
    n = x.shape[0]
    c_out, c_in, kh, kw = weight.shape

    patches_t, ho, wo = im2col_t(x, kh, kw, stride, pad)   # (K, M) f32
    k, m = patches_t.shape

    # Alignment padding: K -> mult of 16 (bf16 sublane packing), M -> mult of
    # block_m (grid tiles), C_out -> mult of 8 (f32 sublanes).  Zero padding is
    # exact for the matmul and contributes 0 to the BN sums.
    k_pad = _round_up(k, 16)
    m_pad = _round_up(m, block_m)
    c_out_pad = _round_up(c_out, 8)
    n_tiles = m_pad // block_m

    patches_bf = jnp.pad(
        patches_t, ((0, k_pad - k), (0, m_pad - m))).astype(jnp.bfloat16)
    w_bf = jnp.pad(
        weight.reshape(c_out, c_in * kh * kw),
        ((0, c_out_pad - c_out), (0, k_pad - k))).astype(jnp.bfloat16)

    cost = pl.CostEstimate(
        flops=2 * m_pad * k_pad * c_out_pad,
        transcendentals=0,
        bytes_accessed=(c_out_pad * k_pad * 2            # weights (bf16)
                        + k_pad * m_pad * 2              # patches (bf16)
                        + c_out_pad * m_pad * 4          # conv out (f32)
                        + n_tiles * c_out_pad * 2 * 4),  # stats
    )
    cparams = pltpu.CompilerParams(
        dimension_semantics=("parallel",),
        vmem_limit_bytes=32 * 1024 * 1024,
    )

    # ---- pass 1: conv matmul + per-tile BN partial sums --------------------
    conv_t, stats = pl.pallas_call(
        conv_stats_kernel,
        out_shape=(
            jax.ShapeDtypeStruct((c_out_pad, m_pad), jnp.float32),
            jax.ShapeDtypeStruct((n_tiles, c_out_pad, 2), jnp.float32),
        ),
        grid=(n_tiles,),
        in_specs=[
            pl.BlockSpec((c_out_pad, k_pad), lambda t: (0, 0)),   # W, resident
            pl.BlockSpec((k_pad, block_m), lambda t: (0, t)),     # patches tile
        ],
        out_specs=(
            pl.BlockSpec((c_out_pad, block_m), lambda t: (0, t)),  # conv tile
            pl.BlockSpec((1, c_out_pad, 2), lambda t: (t, 0, 0)),  # partials
        ),
        compiler_params=cparams,
        cost_estimate=cost,
    )(w_bf, patches_bf)

    # ---- fold full-batch BN stats + affine into scale/bias (tiny, in XLA) --
    sums = jnp.sum(stats, axis=0)                       # (c_out_pad, 2)
    mean = sums[:, 0] / m                               # divide by real M
    var = jnp.maximum(sums[:, 1] / m - mean * mean, 0.0)
    gamma_p = jnp.pad(gamma.astype(jnp.float32), (0, c_out_pad - c_out))
    beta_p = jnp.pad(beta.astype(jnp.float32), (0, c_out_pad - c_out))
    inv = jax.lax.rsqrt(var + BN_EPS)
    scale = (gamma_p * inv).reshape(c_out_pad, 1)
    bias = (beta_p - mean * gamma_p * inv).reshape(c_out_pad, 1)

    # ---- pass 2: y = relu(conv * scale + bias), lane-dense tiles ------------
    out_t = pl.pallas_call(
        bn_relu_kernel,
        out_shape=jax.ShapeDtypeStruct((c_out_pad, m_pad), jnp.float32),
        grid=(n_tiles,),
        in_specs=[
            pl.BlockSpec((c_out_pad, block_m), lambda t: (0, t)),
            pl.BlockSpec((c_out_pad, 1), lambda t: (0, 0)),
            pl.BlockSpec((c_out_pad, 1), lambda t: (0, 0)),
        ],
        out_specs=pl.BlockSpec((c_out_pad, block_m), lambda t: (0, t)),
        compiler_params=cparams,
    )(conv_t, scale, bias)

    # (C_out, M) -> (N, C_out, Ho, Wo): cheap leading-axis transpose.
    out = out_t[:c_out, :m].reshape(c_out, n, ho, wo).transpose(1, 0, 2, 3)
    return out


# --------------------------------------------------------------------------
# Plain-JAX reference mirroring the PyTorch module (training-mode BatchNorm)
# --------------------------------------------------------------------------
def reference(x, weight, gamma, beta, *, stride, pad):
    conv = jax.lax.conv_general_dilated(
        x.astype(jnp.float32), weight.astype(jnp.float32),
        window_strides=(stride, stride),
        padding=[(pad, pad), (pad, pad)],
        dimension_numbers=("NCHW", "OIHW", "NCHW"),
    )
    mean = jnp.mean(conv, axis=(0, 2, 3), keepdims=True)
    var = jnp.mean((conv - mean) ** 2, axis=(0, 2, 3), keepdims=True)
    xh = (conv - mean) * jax.lax.rsqrt(var + BN_EPS)
    y = xh * gamma.reshape(1, -1, 1, 1) + beta.reshape(1, -1, 1, 1)
    return jnp.maximum(y, 0.0)


if __name__ == "__main__":
    # Test 1: small config (BatchNorm2d default init gamma=1, beta=0).
    N, C_IN, H, W = 2, 4, 16, 16
    C_OUT, KH, KW = 8, 3, 3
    STRIDE, PAD = 1, 1

    key = jax.random.PRNGKey(0)
    kx, kw_ = jax.random.split(key)
    x = jax.random.normal(kx, (N, C_IN, H, W), dtype=jnp.float32)
    weight = 0.1 * jax.random.normal(kw_, (C_OUT, C_IN, KH, KW), dtype=jnp.float32)
    gamma = jnp.ones((C_OUT,), dtype=jnp.float32)
    beta = jnp.zeros((C_OUT,), dtype=jnp.float32)

    out = jax.block_until_ready(
        basic_conv_block(x, weight, gamma, beta, stride=STRIDE, pad=PAD))
    ref = reference(x, weight, gamma, beta, stride=STRIDE, pad=PAD)
    assert out.shape == (N, C_OUT, H, W), out.shape
    err = float(jnp.max(jnp.abs(out - ref)))
    assert err < 2e-2, err   # bf16 MXU operands -> loosened tolerance

    # Test 2: the Model's real first layer config
    # BasicConvBlock(in_channels=3, out_channels=32, kernel_size=3, stride=2,
    # padding=0), with non-trivial gamma/beta (exercises M/K/C_out padding).
    N2, C2, H2, W2, CO2 = 2, 3, 17, 17, 32
    k2 = jax.random.PRNGKey(1)
    kx2, kw2, kg2, kb2 = jax.random.split(k2, 4)
    x2 = jax.random.normal(kx2, (N2, C2, H2, W2), dtype=jnp.float32)
    w2 = 0.1 * jax.random.normal(kw2, (CO2, C2, 3, 3), dtype=jnp.float32)
    g2 = 0.5 + jax.random.uniform(kg2, (CO2,), dtype=jnp.float32)
    b2 = 0.1 * jax.random.normal(kb2, (CO2,), dtype=jnp.float32)

    out2 = jax.block_until_ready(
        basic_conv_block(x2, w2, g2, b2, stride=2, pad=0))
    ref2 = reference(x2, w2, g2, b2, stride=2, pad=0)
    assert out2.shape == ref2.shape, (out2.shape, ref2.shape)
    err2 = float(jnp.max(jnp.abs(out2 - ref2)))
    assert err2 < 2e-2, err2

    print("KERNEL_OK")
</pallas_src>

<mosaic_0001>
module attributes {stable_mosaic.version = 11 : i64} {
  func.func @conv_stats_kernel(%arg0: i32, %arg1: memref<8x48xbf16, #tpu.memory_space<vmem>>, %arg2: memref<48x256xbf16, #tpu.memory_space<vmem>>, %arg3: memref<8x256xf32, #tpu.memory_space<vmem>>, %arg4: memref<1x8x2xf32, #tpu.memory_space<vmem>>) attributes {dimension_semantics = [#tpu.dimension_semantics<parallel>], iteration_bounds = array<i64: 2>, scalar_prefetch = 0 : i64, scratch_operands = 0 : i64, tpu.core_type = #tpu.core_type<tc>, window_params = [{pipeline_mode = #tpu.pipeline_mode<synchronous>, transform_indices = @transform_0, window_bounds = array<i64: 8, 48>}, {transform_indices = @transform_1, window_bounds = array<i64: 48, 256>}, {transform_indices = @transform_2, window_bounds = array<i64: 8, 256>}, {transform_indices = @transform_3, window_bounds = array<i64: 1, 8, 2>}]} {
    %c0 = arith.constant 0 : index
    %c0_0 = arith.constant 0 : index
    %0 = vector.load %arg1[%c0, %c0_0] : memref<8x48xbf16, #tpu.memory_space<vmem>>, vector<8x48xbf16>
    %c0_1 = arith.constant 0 : index
    %c0_2 = arith.constant 0 : index
    %1 = vector.load %arg2[%c0_1, %c0_2] : memref<48x256xbf16, #tpu.memory_space<vmem>>, vector<48x256xbf16>
    %cst = arith.constant dense<0.000000e+00> : vector<8x256xf32>
    %2 = tpu.matmul %0, %1, %cst {dimension_numbers = #tpu.dot_dimension_numbers<[1], [0], [0], [1], [0, 0, 1, 1], [], []>} : vector<8x48xbf16>, vector<48x256xbf16>, vector<8x256xf32> -> vector<8x256xf32>
    %c0_3 = arith.constant 0 : index
    %c0_4 = arith.constant 0 : index
    %3 = vector.load %arg3[%c0_3, %c0_4] : memref<8x256xf32, #tpu.memory_space<vmem>>, vector<8x256xf32>
    tpu.vector_store %arg3[%c0_3, %c0_4], %2 {strides = array<i32>} : memref<8x256xf32, #tpu.memory_space<vmem>>, vector<8x256xf32>,
    %cst_5 = arith.constant dense<0.000000e+00> : vector<8xf32>
    %4 = vector.multi_reduction <add>, %2, %cst_5 [1] : vector<8x256xf32> to vector<8xf32>
    %5 = vector.shape_cast %4 : vector<8xf32> to vector<8x1xf32>
    %6 = arith.mulf %2, %2 : vector<8x256xf32>
    %cst_6 = arith.constant dense<0.000000e+00> : vector<8xf32>
    %7 = vector.multi_reduction <add>, %6, %cst_6 [1] : vector<8x256xf32> to vector<8xf32>
    %8 = vector.shape_cast %7 : vector<8xf32> to vector<8x1xf32>
    %c0_7 = arith.constant 0 : index
    %c0_8 = arith.constant 0 : index
    %c0_9 = arith.constant 0 : index
    %9 = vector.load %arg4[%c0_7, %c0_8, %c0_9] : memref<1x8x2xf32, #tpu.memory_space<vmem>>, vector<1x8x1xf32>
    %10 = vector.shape_cast %9 : vector<1x8x1xf32> to vector<8x1xf32>
    %11 = vector.shape_cast %5 : vector<8x1xf32> to vector<1x8x1xf32>
    tpu.vector_store %arg4[%c0_7, %c0_8, %c0_9], %11 {strides = array<i32>} : memref<1x8x2xf32, #tpu.memory_space<vmem>>, vector<1x8x1xf32>,
    %c0_10 = arith.constant 0 : index
    %c0_11 = arith.constant 0 : index
    %c1 = arith.constant 1 : index
    %12 = vector.load %arg4[%c0_10, %c0_11, %c1] : memref<1x8x2xf32, #tpu.memory_space<vmem>>, vector<1x8x1xf32>
    %13 = vector.shape_cast %12 : vector<1x8x1xf32> to vector<8x1xf32>
    %14 = vector.shape_cast %8 : vector<8x1xf32> to vector<1x8x1xf32>
    tpu.vector_store %arg4[%c0_10, %c0_11, %c1], %14 {strides = array<i32>} : memref<1x8x2xf32, #tpu.memory_space<vmem>>, vector<1x8x1xf32>,
    return
  }
  func.func @transform_0(%arg0: i32) -> (i32, i32) {
    %c0_i32 = arith.constant 0 : i32
    %c0_i32_0 = arith.constant 0 : i32
    %c0_i32_1 = arith.constant 0 : i32
    return %c0_i32, %c0_i32_0 : i32, i32
  }
  func.func @transform_1(%arg0: i32) -> (i32, i32) {
    %c0_i32 = arith.constant 0 : i32
    %c0_i32_0 = arith.constant 0 : i32
    return %c0_i32, %arg0 : i32, i32
  }
  func.func @transform_2(%arg0: i32) -> (i32, i32) {
    %c0_i32 = arith.constant 0 : i32
    %c0_i32_0 = arith.constant 0 : i32
    return %c0_i32, %arg0 : i32, i32
  }
  func.func @transform_3(%arg0: i32) -> (i32, i32, i32) {
    %c0_i32 = arith.constant 0 : i32
    %c0_i32_0 = arith.constant 0 : i32
    %c0_i32_1 = arith.constant 0 : i32
    return %arg0, %c0_i32, %c0_i32_0 : i32, i32, i32
  }
}

module attributes {stable_mosaic.version = 11 : i64} {
  func.func @bn_relu_kernel(%arg0: i32, %arg1: memref<8x256xf32, #tpu.memory_space<vmem>>, %arg2: memref<8x1xf32, #tpu.memory_space<vmem>>, %arg3: memref<8x1xf32, #tpu.memory_space<vmem>>, %arg4: memref<8x256xf32, #tpu.memory_space<vmem>>) attributes {dimension_semantics = [#tpu.dimension_semantics<parallel>], iteration_bounds = array<i64: 2>, scalar_prefetch = 0 : i64, scratch_operands = 0 : i64, tpu.core_type = #tpu.core_type<tc>, window_params = [{transform_indices = @transform_0, window_bounds = array<i64: 8, 256>}, {pipeline_mode = #tpu.pipeline_mode<synchronous>, transform_indices = @transform_1, window_bounds = array<i64: 8, 1>}, {pipeline_mode = #tpu.pipeline_mode<synchronous>, transform_indices = @transform_2, window_bounds = array<i64: 8, 1>}, {transform_indices = @transform_3, window_bounds = array<i64: 8, 256>}]} {
    %c0 = arith.constant 0 : index
    %c0_0 = arith.constant 0 : index
    %0 = vector.load %arg1[%c0, %c0_0] : memref<8x256xf32, #tpu.memory_space<vmem>>, vector<8x256xf32>
    %c0_1 = arith.constant 0 : index
    %c0_2 = arith.constant 0 : index
    %1 = vector.load %arg2[%c0_1, %c0_2] : memref<8x1xf32, #tpu.memory_space<vmem>>, vector<8x1xf32>
    %2 = vector.broadcast %1 : vector<8x1xf32> to vector<8x256xf32>
    %3 = arith.mulf %0, %2 : vector<8x256xf32>
    %c0_3 = arith.constant 0 : index
    %c0_4 = arith.constant 0 : index
    %4 = vector.load %arg3[%c0_3, %c0_4] : memref<8x1xf32, #tpu.memory_space<vmem>>, vector<8x1xf32>
    %5 = vector.broadcast %4 : vector<8x1xf32> to vector<8x256xf32>
    %6 = arith.addf %3, %5 : vector<8x256xf32>
    %cst = arith.constant 0.000000e+00 : f32
    %7 = vector.broadcast %cst : f32 to vector<8x256xf32>
    %8 = arith.maximumf %6, %7 : vector<8x256xf32>
    %c0_5 = arith.constant 0 : index
    %c0_6 = arith.constant 0 : index
    %9 = vector.load %arg4[%c0_5, %c0_6] : memref<8x256xf32, #tpu.memory_space<vmem>>, vector<8x256xf32>
    tpu.vector_store %arg4[%c0_5, %c0_6], %8 {strides = array<i32>} : memref<8x256xf32, #tpu.memory_space<vmem>>, vector<8x256xf32>,
    return
  }
  func.func @transform_0(%arg0: i32) -> (i32, i32) {
    %c0_i32 = arith.constant 0 : i32
    %c0_i32_0 = arith.constant 0 : i32
    return %c0_i32, %arg0 : i32, i32
  }
  func.func @transform_1(%arg0: i32) -> (i32, i32) {
    %c0_i32 = arith.constant 0 : i32
    %c0_i32_0 = arith.constant 0 : i32
    %c0_i32_1 = arith.constant 0 : i32
    return %c0_i32, %c0_i32_0 : i32, i32
  }
  func.func @transform_2(%arg0: i32) -> (i32, i32) {
    %c0_i32 = arith.constant 0 : i32
    %c0_i32_0 = arith.constant 0 : i32
    %c0_i32_1 = arith.constant 0 : i32
    return %c0_i32, %c0_i32_0 : i32, i32
  }
  func.func @transform_3(%arg0: i32) -> (i32, i32) {
    %c0_i32 = arith.constant 0 : i32
    %c0_i32_0 = arith.constant 0 : i32
    return %c0_i32, %arg0 : i32, i32
  }
}

</mosaic_0001>

<bundles_post_ra>
// kernel: basic_conv_block.2
= control target key start
LH: loop header
LB: loop body
LE: loop exit
PB: predicated region body
PF: predicated region fallthrough
CT: control target
= control target key end

     0   :  { %s530_s12 = smov 0   ;;  %s532_s13 = smov 0   ;;  %s591_s0 = inlined_call_operand.vmem [shape: bf16[8,48], index: 0, kind: input, shape index: {}]   ;;  %s592_s1 = inlined_call_operand.vmem [shape: bf16[48,512], index: 1, kind: input, shape index: {}]   ;;  %s593_s2 = inlined_call_operand.vmem [shape: f32[8,512], index: 2, kind: output, shape index: {0}]   ;;  %s594_s3 = inlined_call_operand.vmem [shape: f32[2,8,2], index: 3, kind: output, shape index: {1}]  }
   0x1   :  { %s534_s14 = smov 0  }
   0x2 LB: > { %s546_s15 = sadd.s32 4294967295, %s508_s14   ;;  %s549_s16 = sadd.s32 1, %s508_s14   ;;  %s508_s14 = sphi %s534_s14, %s597_s14   ;;  %s504_s13 = sphi %s532_s13, %s596_s13   ;;  %s500_s12 = sphi %s530_s12, %s595_s12  }
   0x3   : > { %s39_s17 = ssub.s32 %s508_s14, %s549_s16  ;;  %s42_s18 = sadd.s32 1, %s504_s13 }
   0x4   : > { %p40_p0 = scmp.eq.s32.totalorder %s39_s17, 0  ;;  %p49_p1 = scmp.ne.s32.totalorder %s504_s13, %s500_s12 }
   0x5   : > { %p50_p2 = scmp.eq.s32.totalorder %s508_s14, 0  ;;  %p418_p4 = scmp.ge.s32.totalorder %s508_s14, 2 }
   0x6   : > { %s558_s19 = scalar_select %p40_p0, %s504_s13, %s42_s18  }
   0x7   : > { %p51_p3 = por %p50_p2, %p49_p1  ;;  %130 = sbr.rel (%p418_p4) target bundleno = 22 (0x16), region = 20 }
   0xc   : > { %133 = sbr.rel (!%p51_p3) target bundleno = 22 (0x16), region = 24  ;;  %s135_s20 = sand.u32 (%p51_p3), 1, %s504_s13  }
   0xd   : > { %s453_s21 = sshll.u32 (%p51_p3), %s508_s14, 3  ;;  %s460_s22 = smul.u32 (%p51_p3), 48, %s135_s20 }
   0xe   : > { %s140_s25 = scalar_lea.vmem (%p51_p3), %s592_s1, %s453_s21 }
   0xf   : > { %v179_v0 = vld [vmem:[%s140_s25] sm:$0xff] (%p51_p3)  ;;  %v181_v1 = vld [vmem:[%s140_s25 + $0x10] sm:$0xff] (%p51_p3)  ;;  %s137_s26 = scalar_lea.vmem (%p51_p3), [#allocation2], %s460_s22 }
  0x10   : > { %v183_v2 = vld [vmem:[%s140_s25 + $0x20] sm:$0xff] (%p51_p3)  ;;  %180 = vst [vmem:[%s137_s26] sm:$0xff] (%p51_p3), %v179_v0  ;;  %v185_v3 = vld [vmem:[%s140_s25 + $0x30] sm:$0xff] (%p51_p3) }
  0x11   : > { %182 = vst [vmem:[%s137_s26 + $0x8] sm:$0xff] %v181_v1  ;;  %v187_v4 = vld [vmem:[%s140_s25 + $0x40] sm:$0xff]  ;;  %v189_v5 = vld [vmem:[%s140_s25 + $0x50] sm:$0xff] }
  0x12   : > { %184 = vst [vmem:[%s137_s26 + $0x10] sm:$0xff] %v183_v2 }
  0x13   : > { %186 = vst [vmem:[%s137_s26 + $0x18] sm:$0xff] %v185_v3 }
  0x14   : > { %188 = vst [vmem:[%s137_s26 + $0x20] sm:$0xff] %v187_v4 }
  0x15   : > { %190 = vst [vmem:[%s137_s26 + $0x28] sm:$0xff] %v189_v5 }
  0x16 PF: > { %p421_p5 = scmp.ge.s32.totalorder %s508_s14, 1  ;;  %p195_p6 = scmp.lt.s32.totalorder %s508_s14, 3 }
  0x18   : > { %p196_p7 = pnand %p421_p5, %p195_p6 }
  0x19   : > { %s202_s27 = sand.u32 (!%p196_p7), 1, %s500_s12   ;;  %s422_s5 = sshll.u32 (!%p196_p7), %s546_s15, 1 }
  0x1a   : > { %199 = sbr.rel (%p196_p7) target bundleno = 299 (0x12b), region = 62  ;;  %p231_p8 = scmp.lt.s32.totalorder (!%p196_p7), %s422_s5, 3 }
  0x1b   : > { %s461_s28 = smul.u32 (!%p196_p7), 48, %s202_s27  ;;  %p236_p9 = scmp.lt.s32.totalorder (!%p196_p7), %s546_s15, 1 }
  0x1d   : > { %s204_s29 = scalar_lea.vmem (!%p196_p7), [#allocation2], %s461_s28 }
  0x1f   : > { %v443_v6 = vld [vmem:[%s204_s29 + $0x20] sm:$0xf]  ;;  %v459_v7 = vld [vmem:[%s204_s29 + $0x24] sm:$0xf0]  ;;  %v458_v8 = vld [vmem:[%s204_s29 + $0x24] sm:$0xf] }
  0x20   : > { %v444_v9 = vor.u32 %v459_v7, %v443_v6  ;;  %v445_v10 = vld [vmem:[%s204_s29 + $0x28] sm:$0xf0]  ;;  %v435_v11 = vld [vmem:[%s204_s29 + $0x10] sm:$0xf]  ;;  %v457_v12 = vld [vmem:[%s204_s29 + $0x14] sm:$0xf0] }
  0x21   : > { %v448_v13 = vor.u32 %v458_v8, %v445_v10  ;;  %v456_v14 = vld [vmem:[%s204_s29 + $0x14] sm:$0xf]  ;;  %v437_v15 = vld [vmem:[%s204_s29 + $0x18] sm:$0xf0]  ;;  %v436_v16 = vor.u32 %v457_v12, %v435_v11  ;;  %v427_v18 = vld [vmem:[%s204_s29] sm:$0xf] }
  0x22   : > { %287 = vmatpush.bf16.msra.mxu0 %v444_v9  ;;  %v440_v17 = vor.u32 %v456_v14, %v437_v15  ;;  %v455_v19 = vld [vmem:[%s204_s29 + $0x4] sm:$0xf0]  ;;  %v454_v20 = vld [vmem:[%s204_s29 + $0x4] sm:$0xf]  ;;  %v429_v21 = vld [vmem:[%s204_s29 + $0x8] sm:$0xf0] }
  0x23   : > { %300 = vmatpush.bf16.msra.mxu1 %v448_v13  ;;  %v428_v22 = vor.u32 %v455_v19, %v427_v18  ;;  %v432_v23 = vor.u32 %v454_v20, %v429_v21  ;;  %v241_v24 = vld [vmem:[%s591_s0] sm:$0xf]  ;;  %vm278_vm0 = vcmask 392192   ;;  %s599_s5 = smov (!%p231_p8, %s422_s5), 3  ;;  %s601_s15 = smov (!%p236_p9, %s546_s15), 1  ;;  %vm318_vm1 = vcmask 7168  }
  0x24   : > { %s423_s6 = sshll.u32 %s599_s5, 3  ;;  %s424_s10 = sshll.u32 %s601_s15, 3  ;;  %vm320_vm2 = vcmask 15368  }
  0x25   : > { %s234_s9 = scalar_lea.vmem %s593_s2, %s423_s6  ;;  %s239_s14 = scalar_lea.vmem %s594_s3, %s424_s10 }
  0x26   : > { %288 = vmatpush.bf16.msra.mxu0 %v436_v16 }
  0x27   : > { %301 = vmatpush.bf16.msra.mxu1 %v440_v17 }
  0x2a   : > { %289 = vmatpush.bf16.msra.mxu0 %v428_v22 }
  0x2b   : > { %302 = vmatpush.bf16.msra.mxu1 %v432_v23 }
  0x2d   : > { %449 = vmatmul.msk.bf16.vlgmr.msra.gmra.mxu0 %vm278_vm0, %v241_v24 }
  0x2e   : > { %450 = vmatmul.msk.bf16.vlgmr.msra.gmra.mxu1 %vm278_vm0, %v241_v24 }
  0xaa   : > { %v291_v25 = vpop.f32.mrf.mxu0 }
  0xab   : > { %308 = vst [vmem:[%s234_s9] sm:$0xff] %v291_v25  ;;  %v304_v26 = vpop.f32.mrf.mxu1  ;;  %v313_v28 = vmul.f32 %v291_v25, %v291_v25 }
  0xac   : > { %309 = vst [vmem:[%s234_s9 + $0x8] sm:$0xff] %v304_v26  ;;  %v310_v27 = vadd.f32 %v304_v26, %v291_v25  ;;  %v314_v29 = vmul.f32 %v304_v26, %v304_v26 }
  0xae   : > { %311 = vadd.xlane.f32.xlu0 %v310_v27  ;;  %v315_v32 = vadd.f32 %v314_v29, %v313_v28 }
  0xb2   : > { %v293_v30 = vpop.f32.mrf.mxu0 }
  0xb3   : > { %v306_v31 = vpop.f32.mrf.mxu1 }
  0xb6   : > { %316 = vadd.xlane.f32.xlu0 %v315_v32 }
 0x121   : > { %v312_v33 = vpop.xlane.xlu0 %311 }
 0x122   : > { %319 = vst.msk [vmem:[%s239_s14] sm:$0xff] %vm318_vm1, %v312_v33 }
 0x129   : > { %v317_v34 = vpop.xlane.xlu0 %316 }
 0x12a   : > { %321 = vst.msk [vmem:[%s239_s14] sm:$0xff] %vm320_vm2, %v317_v34 }
 0x12b PF: > { %p11_p10 = scmp.ge.s32.totalorder %s549_s16, 4   ;;  %s595_s12 = smov %s504_s13 }
 0x12c   : > { %s596_s13 = smov %s558_s19  ;;  %s597_s14 = smov %s549_s16 }
 0x12d   :  { %13 = sbr.rel (!%p11_p10) target bundleno = 2 (0x2), region = 113 }

// kernel: basic_conv_block.3
= control target key start
LH: loop header
LB: loop body
LE: loop exit
PB: predicated region body
PF: predicated region fallthrough
CT: control target
= control target key end

     0   :  { %s302_s12 = smov 0   ;;  %s325_s0 = inlined_call_operand.vmem [shape: f32[8,512], index: 0, kind: input, shape index: {}]   ;;  %s326_s1 = inlined_call_operand.vmem [shape: f32[8,1], index: 1, kind: input, shape index: {}]   ;;  %s327_s2 = inlined_call_operand.vmem [shape: f32[8,1], index: 2, kind: input, shape index: {}]   ;;  %s328_s3 = inlined_call_operand.vmem [shape: f32[8,512], index: 3, kind: output, shape index: {}]  }
   0x1 LB: > { %s252_s13 = sadd.s32 4294967295, %s279_s12   ;;  %p256_p0 = scmp.ge.s32.totalorder %s279_s12, 1  ;;  %s279_s12 = sphi %s302_s12, %s13_s12  }
   0x2   : > { %p138_p1 = scmp.lt.s32.totalorder %s279_s12, 3 }
   0x4   : > { %p139_p2 = pnand %p256_p0, %p138_p1 }
   0x5   : > { %s257_s18 = sshll.u32 (!%p139_p2), %s252_s13, 1 }
   0x6   : > { %142 = sbr.rel (%p139_p2) target bundleno = 142 (0x8e), region = 32  ;;  %p163_p3 = scmp.lt.s32.totalorder (!%p139_p2), %s257_s18, 3 }
   0xb   : > { %v176_v0 = vld [vmem:[%s326_s1] sm:$0xff]  ;;  %v281_v1 = vmov 0   ;;  %s330_s18 = smov (!%p163_p3, %s257_s18), 3 }
   0xc   : > { %272 = vset.pattern.permute.xlu0 %v281_v1  ;;  %v184_v2 = vld [vmem:[%s327_s2] sm:$0xff]  ;;  %s258_s19 = sshll.u32 %s330_s18, 3 }
   0xd   : > { %179 = vperm.xlu0 %272, %v176_v0   ;;  %s166_s22 = scalar_lea.vmem %s325_s0, %s258_s19  ;;  %s172_s25 = scalar_lea.vmem %s328_s3, %s258_s19 }
   0xe   : > { %v174_v4 = vld [vmem:[%s166_s22] sm:$0xff]  ;;  %v175_v5 = vld [vmem:[%s166_s22 + $0x8] sm:$0xff] }
  0x15   : > { %187 = vperm.xlu0 %272, %v184_v2  }
  0x7f   : > { %v180_v3 = vpop.permute.xlu0 %179 }
  0x80   : > { %v182_v6 = vmul.f32 %v180_v3, %v174_v4  ;;  %v183_v7 = vmul.f32 %v180_v3, %v175_v5 }
  0x87   : > { %v188_v8 = vpop.permute.xlu0 %187 }
  0x88   : > { %v190_v9 = vadd.f32 %v188_v8, %v182_v6  ;;  %v191_v10 = vadd.f32 %v188_v8, %v183_v7 }
  0x8a   : > { %v192_v11 = vmax.f32 %v190_v9, 0.0  ;;  %v193_v12 = vmax.f32 %v191_v10, 0.0 }
  0x8c   : > { %194 = vst [vmem:[%s172_s25] sm:$0xff] %v192_v11 }
  0x8d   : > { %195 = vst [vmem:[%s172_s25 + $0x8] sm:$0xff] %v193_v12 }
  0x8e PF: > { %s13_s12 = sadd.s32 1, %s279_s12  }
  0x8f   : > { %p10_p4 = scmp.ge.s32.totalorder %s13_s12, 4  }
  0x91   :  { %12 = sbr.rel (!%p10_p4) target bundleno = 1 (0x1), region = 62 }

</bundles_post_ra>
